<compile_context>
chip_gen: v7x
topology: tpu7x:2x2x1
jax: 0.10.0
libtpu: 0.0.40
codegen_flags: <defaults>
</compile_context>

<pallas_src>
import jax
import jax.numpy as jnp
from jax.experimental import pallas as pl
from jax.experimental.pallas import tpu as pltpu

HIDDEN = 64        # fc1/fc2 width (fixed by the module)
ROW_ALIGN = 16     # batch-row alignment (safe for bf16 sublane packing)
MAX_TM = 4096      # max batch-tile rows (few-hundred-KiB footprint per buffer)
MIN_GRID = 8       # prefer >= this many tiles so v7x's 2 TCs can split the grid
TM_FLOOR = 256     # only shrink tm for MIN_GRID if tiles stay >= this many rows


def _round_up(x, m):
    return pl.cdiv(x, m) * m


def actor_kernel(obs_ref, w1_ref, b1_ref, w2_ref, b2_ref, w3_ref, b3_ref,
                 mean_ref):
    # Cast obs to the MXU operand dtype in-kernel (hidden under DMA slack).
    obs = obs_ref[...].astype(w1_ref.dtype)
    # fc1 + tanh : MXU bf16 operands, f32 accumulate; bias/tanh in f32.
    x = jnp.dot(obs, w1_ref[...], preferred_element_type=jnp.float32)
    x = jnp.tanh(x + b1_ref[...])
    # fc2 + tanh
    x = jnp.dot(x.astype(w2_ref.dtype), w2_ref[...],
                preferred_element_type=jnp.float32)
    x = jnp.tanh(x + b2_ref[...])
    # mean head: write only act_dim columns (masked lane stores are cheap here).
    mean = jnp.dot(x.astype(w3_ref.dtype), w3_ref[...],
                   preferred_element_type=jnp.float32)
    mean_ref[...] = mean + b3_ref[...]


def actor_forward(obs, params, compute_dtype=jnp.bfloat16):
    """ActorNet forward pass.

    obs: [B, obs_dim] float32
    returns (mean [B, act_dim] float32, std [1, act_dim] float32).
    std is obs-independent; callers broadcast it lazily against mean.
    """
    w1, b1, w2, b2, w3, b3, log_std = params
    B, obs_dim = obs.shape
    act_dim = w3.shape[1]

    # std = exp(log_std): tiny, obs-independent; never broadcast/stored per-row.
    std = jnp.exp(log_std.astype(jnp.float32))          # (1, act_dim)

    # Batch tiling: largest tile up to MAX_TM, but cap tm so large batches get
    # >= MIN_GRID tiles (keeps both v7x TensorCores busy on the "parallel" axis).
    b_aligned = _round_up(B, ROW_ALIGN)
    tm = min(MAX_TM, b_aligned)
    if b_aligned >= MIN_GRID * TM_FLOOR:
        tm = min(tm, _round_up(pl.cdiv(b_aligned, MIN_GRID), ROW_ALIGN))

    # Pad the batch only when it doesn't divide evenly into tiles.
    b_pad = _round_up(B, tm)
    obs_p = obs if b_pad == B else jnp.pad(obs, ((0, b_pad - B), (0, 0)))

    # Weights in bf16 (MXU operands); biases stay f32 for the VPU/EUP.
    w1c = w1.astype(compute_dtype)
    w2c = w2.astype(compute_dtype)
    w3c = w3.astype(compute_dtype)
    b1f = b1.astype(jnp.float32)
    b2f = b2.astype(jnp.float32)
    b3f = b3.astype(jnp.float32)

    grid = (b_pad // tm,)

    def const_spec(a):
        # Whole array, same block every grid step -> stays VMEM-resident.
        return pl.BlockSpec(a.shape, lambda i: (0,) * a.ndim)

    mean_p = pl.pallas_call(
        actor_kernel,
        out_shape=jax.ShapeDtypeStruct((b_pad, act_dim), jnp.float32),
        grid=grid,
        in_specs=[
            pl.BlockSpec((tm, obs_dim), lambda i: (i, 0)),   # obs tile (f32)
            const_spec(w1c), const_spec(b1f),
            const_spec(w2c), const_spec(b2f),
            const_spec(w3c), const_spec(b3f),
        ],
        out_specs=pl.BlockSpec((tm, act_dim), lambda i: (i, 0)),
        compiler_params=pltpu.CompilerParams(
            dimension_semantics=("parallel",)),
    )(obs_p, w1c, b1f, w2c, b2f, w3c, b3f)

    mean = mean_p if b_pad == B else mean_p[:B]
    return mean, std


def init_params(key, obs_dim, act_dim, hidden=HIDDEN):
    """Mirrors nn.Linear's U(-1/sqrt(fan_in), 1/sqrt(fan_in)) init.

    Weights stored as [in, out] (transposed vs. PyTorch's [out, in]); biases
    as [1, out] for 2-D TPU-friendly broadcasting.
    """
    keys = jax.random.split(key, 6)

    def linear(kw, kb, fan_in, fan_out):
        bound = 1.0 / jnp.sqrt(jnp.float32(fan_in))
        w = jax.random.uniform(kw, (fan_in, fan_out), jnp.float32, -bound, bound)
        b = jax.random.uniform(kb, (1, fan_out), jnp.float32, -bound, bound)
        return w, b

    w1, b1 = linear(keys[0], keys[1], obs_dim, hidden)
    w2, b2 = linear(keys[2], keys[3], hidden, hidden)
    w3, b3 = linear(keys[4], keys[5], hidden, act_dim)
    log_std = jnp.full((1, act_dim), -0.7, dtype=jnp.float32)
    return (w1, b1, w2, b2, w3, b3, log_std)


def reference_forward(obs, params):
    """Pure-JAX f32 reference for correctness check."""
    w1, b1, w2, b2, w3, b3, log_std = params
    x = jnp.tanh(obs @ w1 + b1)
    x = jnp.tanh(x @ w2 + b2)
    mean = x @ w3 + b3
    std = jnp.broadcast_to(jnp.exp(log_std), mean.shape)
    return mean, std


if __name__ == "__main__":
    obs_dim, act_dim, batch = 16, 4, 8
    key = jax.random.PRNGKey(0)
    k_obs, k_params = jax.random.split(key)

    params = init_params(k_params, obs_dim, act_dim)
    obs = jax.random.normal(k_obs, (batch, obs_dim), dtype=jnp.float32)

    mean_ref, std_ref = reference_forward(obs, params)

    # f32 operand path: exact-ish vs. reference.
    mean32, std32 = actor_forward(obs, params, compute_dtype=jnp.float32)
    jax.block_until_ready((mean32, std32))
    assert jnp.allclose(mean32, mean_ref, atol=1e-5, rtol=1e-5), "f32 mean mismatch"
    assert jnp.allclose(jnp.broadcast_to(std32, std_ref.shape), std_ref,
                        atol=1e-6, rtol=1e-6), "std mismatch"

    # bf16-operand path (default, per perf review): looser tolerance.
    mean_bf, std_bf = actor_forward(obs, params)
    jax.block_until_ready((mean_bf, std_bf))
    assert jnp.allclose(mean_bf, mean_ref, atol=5e-2, rtol=5e-2), "bf16 mean mismatch"
    assert jnp.allclose(jnp.broadcast_to(std_bf, std_ref.shape), std_ref,
                        atol=1e-6, rtol=1e-6), "std mismatch"

    # TODO(synk): Normal(mean, std).sample() in get_action() is not reproduced
    # here; the distribution is fully specified by (mean, std).
    print("KERNEL_OK")
</pallas_src>

<mosaic_0001>
module attributes {stable_mosaic.version = 11 : i64} {
  func.func @actor_kernel(%arg0: i32, %arg1: memref<16x16xf32, #tpu.memory_space<vmem>>, %arg2: memref<16x64xf32, #tpu.memory_space<vmem>>, %arg3: memref<1x64xf32, #tpu.memory_space<vmem>>, %arg4: memref<64x64xf32, #tpu.memory_space<vmem>>, %arg5: memref<1x64xf32, #tpu.memory_space<vmem>>, %arg6: memref<64x4xf32, #tpu.memory_space<vmem>>, %arg7: memref<1x4xf32, #tpu.memory_space<vmem>>, %arg8: memref<16x4xf32, #tpu.memory_space<vmem>>) attributes {dimension_semantics = [#tpu.dimension_semantics<parallel>], iteration_bounds = array<i64: 1>, scalar_prefetch = 0 : i64, scratch_operands = 0 : i64, tpu.core_type = #tpu.core_type<tc>, window_params = [{transform_indices = @transform_0, window_bounds = array<i64: 16, 16>}, {pipeline_mode = #tpu.pipeline_mode<synchronous>, transform_indices = @transform_1, window_bounds = array<i64: 16, 64>}, {pipeline_mode = #tpu.pipeline_mode<synchronous>, transform_indices = @transform_2, window_bounds = array<i64: 1, 64>}, {pipeline_mode = #tpu.pipeline_mode<synchronous>, transform_indices = @transform_3, window_bounds = array<i64: 64, 64>}, {pipeline_mode = #tpu.pipeline_mode<synchronous>, transform_indices = @transform_4, window_bounds = array<i64: 1, 64>}, {pipeline_mode = #tpu.pipeline_mode<synchronous>, transform_indices = @transform_5, window_bounds = array<i64: 64, 4>}, {pipeline_mode = #tpu.pipeline_mode<synchronous>, transform_indices = @transform_6, window_bounds = array<i64: 1, 4>}, {transform_indices = @transform_7, window_bounds = array<i64: 16, 4>}]} {
    %c0 = arith.constant 0 : index
    %c0_0 = arith.constant 0 : index
    %0 = vector.load %arg1[%c0, %c0_0] : memref<16x16xf32, #tpu.memory_space<vmem>>, vector<16x16xf32>
    %c0_1 = arith.constant 0 : index
    %c0_2 = arith.constant 0 : index
    %1 = vector.load %arg2[%c0_1, %c0_2] : memref<16x64xf32, #tpu.memory_space<vmem>>, vector<16x64xf32>
    %cst = arith.constant dense<0.000000e+00> : vector<16x64xf32>
    %2 = tpu.matmul %0, %1, %cst {dimension_numbers = #tpu.dot_dimension_numbers<[1], [0], [0], [1], [0, 0, 1, 1], [], []>} : vector<16x16xf32>, vector<16x64xf32>, vector<16x64xf32> -> vector<16x64xf32>
    %c0_3 = arith.constant 0 : index
    %c0_4 = arith.constant 0 : index
    %3 = vector.load %arg3[%c0_3, %c0_4] : memref<1x64xf32, #tpu.memory_space<vmem>>, vector<1x64xf32>
    %4 = vector.broadcast %3 : vector<1x64xf32> to vector<16x64xf32>
    %5 = arith.addf %2, %4 : vector<16x64xf32>
    %6 = math.tanh %5 : vector<16x64xf32>
    %c0_5 = arith.constant 0 : index
    %c0_6 = arith.constant 0 : index
    %7 = vector.load %arg4[%c0_5, %c0_6] : memref<64x64xf32, #tpu.memory_space<vmem>>, vector<64x64xf32>
    %cst_7 = arith.constant dense<0.000000e+00> : vector<16x64xf32>
    %8 = tpu.matmul %6, %7, %cst_7 {dimension_numbers = #tpu.dot_dimension_numbers<[1], [0], [0], [1], [0, 0, 1, 1], [], []>} : vector<16x64xf32>, vector<64x64xf32>, vector<16x64xf32> -> vector<16x64xf32>
    %c0_8 = arith.constant 0 : index
    %c0_9 = arith.constant 0 : index
    %9 = vector.load %arg5[%c0_8, %c0_9] : memref<1x64xf32, #tpu.memory_space<vmem>>, vector<1x64xf32>
    %10 = vector.broadcast %9 : vector<1x64xf32> to vector<16x64xf32>
    %11 = arith.addf %8, %10 : vector<16x64xf32>
    %12 = math.tanh %11 : vector<16x64xf32>
    %c0_10 = arith.constant 0 : index
    %c0_11 = arith.constant 0 : index
    %13 = vector.load %arg6[%c0_10, %c0_11] : memref<64x4xf32, #tpu.memory_space<vmem>>, vector<64x4xf32>
    %cst_12 = arith.constant dense<0.000000e+00> : vector<16x4xf32>
    %14 = tpu.matmul %12, %13, %cst_12 {dimension_numbers = #tpu.dot_dimension_numbers<[1], [0], [0], [1], [0, 0, 1, 1], [], []>} : vector<16x64xf32>, vector<64x4xf32>, vector<16x4xf32> -> vector<16x4xf32>
    %c0_13 = arith.constant 0 : index
    %c0_14 = arith.constant 0 : index
    %15 = vector.load %arg7[%c0_13, %c0_14] : memref<1x4xf32, #tpu.memory_space<vmem>>, vector<1x4xf32>
    %16 = vector.broadcast %15 : vector<1x4xf32> to vector<16x4xf32>
    %17 = arith.addf %14, %16 : vector<16x4xf32>
    %c0_15 = arith.constant 0 : index
    %c0_16 = arith.constant 0 : index
    %18 = vector.load %arg8[%c0_15, %c0_16] : memref<16x4xf32, #tpu.memory_space<vmem>>, vector<16x4xf32>
    tpu.vector_store %arg8[%c0_15, %c0_16], %17 {strides = array<i32>} : memref<16x4xf32, #tpu.memory_space<vmem>>, vector<16x4xf32>,
    return
  }
  func.func @transform_0(%arg0: i32) -> (i32, i32) {
    %c0_i32 = arith.constant 0 : i32
    %c0_i32_0 = arith.constant 0 : i32
    return %arg0, %c0_i32 : i32, i32
  }
  func.func @transform_1(%arg0: i32) -> (i32, i32) {
    %c0_i32 = arith.constant 0 : i32
    %c0_i32_0 = arith.constant 0 : i32
    %c0_i32_1 = arith.constant 0 : i32
    return %c0_i32, %c0_i32_0 : i32, i32
  }
  func.func @transform_2(%arg0: i32) -> (i32, i32) {
    %c0_i32 = arith.constant 0 : i32
    %c0_i32_0 = arith.constant 0 : i32
    %c0_i32_1 = arith.constant 0 : i32
    return %c0_i32, %c0_i32_0 : i32, i32
  }
  func.func @transform_3(%arg0: i32) -> (i32, i32) {
    %c0_i32 = arith.constant 0 : i32
    %c0_i32_0 = arith.constant 0 : i32
    %c0_i32_1 = arith.constant 0 : i32
    return %c0_i32, %c0_i32_0 : i32, i32
  }
  func.func @transform_4(%arg0: i32) -> (i32, i32) {
    %c0_i32 = arith.constant 0 : i32
    %c0_i32_0 = arith.constant 0 : i32
    %c0_i32_1 = arith.constant 0 : i32
    return %c0_i32, %c0_i32_0 : i32, i32
  }
  func.func @transform_5(%arg0: i32) -> (i32, i32) {
    %c0_i32 = arith.constant 0 : i32
    %c0_i32_0 = arith.constant 0 : i32
    %c0_i32_1 = arith.constant 0 : i32
    return %c0_i32, %c0_i32_0 : i32, i32
  }
  func.func @transform_6(%arg0: i32) -> (i32, i32) {
    %c0_i32 = arith.constant 0 : i32
    %c0_i32_0 = arith.constant 0 : i32
    %c0_i32_1 = arith.constant 0 : i32
    return %c0_i32, %c0_i32_0 : i32, i32
  }
  func.func @transform_7(%arg0: i32) -> (i32, i32) {
    %c0_i32 = arith.constant 0 : i32
    %c0_i32_0 = arith.constant 0 : i32
    return %arg0, %c0_i32 : i32, i32
  }
}

</mosaic_0001>

<bundles_post_ra>
// kernel: tpu_custom_call.1
= control target key start
LH: loop header
LB: loop body
LE: loop exit
PB: predicated region body
PF: predicated region fallthrough
CT: control target
= control target key end

     0   :  { %12 = vsyncpa [#allocation3], 0  ;;  %s662_s0 = inlined_call_operand.hbm [shape: f32[16,16], index: 0, kind: input, shape index: {}]   ;;  %s663_s1 = inlined_call_operand.hbm [shape: f32[16,64], index: 1, kind: input, shape index: {}]   ;;  %s664_s2 = inlined_call_operand.vmem [shape: f32[1,64], index: 2, kind: input, shape index: {}]   ;;  %s665_s3 = inlined_call_operand.vmem [shape: f32[64,64], index: 3, kind: input, shape index: {}]   ;;  %s666_s4 = inlined_call_operand.vmem [shape: f32[1,64], index: 4, kind: input, shape index: {}]   ;;  %s667_s5 = inlined_call_operand.vmem [shape: f32[64,4], index: 5, kind: input, shape index: {}]   ;;  %s668_s6 = inlined_call_operand.vmem [shape: f32[1,4], index: 6, kind: input, shape index: {}]   ;;  %s669_s7 = inlined_call_operand.vmem [shape: f32[16,4], index: 7, kind: output, shape index: {}]  }
   0x1   :  { %13 = vsyncpa [#allocation5], 0  ;;  %s527_s24 = smov [#allocation2]   ;;  %s479_s28 = scalar_lea.hbm %s662_s0, 256 }
   0x2   :  { %s19_s25 = sshll.u32 %s527_s24, 4  ;;  %p480_p0 = scmp.ne.s32.totalorder %s662_s0, %s479_s28  ;;  %s20_s25 = int_to_ptr.vmem [resolvable:$true] %s19_s25 }
   0x3   :  { %p483_p1 = scmp.lt.u32.totalorder %s479_s28, %s662_s0 }
   0x5   :  { %p485_p2 = pnand %p483_p1, %p480_p0 }
   0x7   :  { %488 = shalt.err (!%p485_p2)
}
   0x8   :  { %s489_s10 = scalar_lea.vmem %s20_s25, 256  ;;  %p494_p4 = scmp.lt.s32.totalorder %s20_s25, %s20_s25 }
   0x9   :  { %p490_p3 = scmp.ne.s32.totalorder %s20_s25, %s489_s10  ;;  %p495_p5 = scmp.lt.s32.totalorder %s489_s10, %s489_s10 }
   0xb   :  { %p496_p6 = por %p495_p5, %p494_p4 }
   0xd   :  { %p497_p7 = pnand %p496_p6, %p490_p3 }
   0xf   :  { %500 = shalt.err (!%p497_p7)
}
  0x10   :  { %s528_s11 = smov 128   ;;  %s529_s12 = smov 8  }
  0x11   :  { %25 = dma.hbm_to_vmem [thread:$0]  %s662_s0, 256, %s20_s25, [#allocation3], %s528_s11, %s528_s11, %s529_s12  }
  0x12   :  { %s530_s15 = smov [#allocation4]   ;;  %s501_s19 = scalar_lea.hbm %s663_s1, 256 }
  0x13   :  { %s31_s16 = sshll.u32 %s530_s15, 4  ;;  %p502_p8 = scmp.ne.s32.totalorder %s663_s1, %s501_s19  ;;  %s32_s16 = int_to_ptr.vmem [resolvable:$true] %s31_s16 }
  0x14   :  { %p505_p9 = scmp.lt.u32.totalorder %s501_s19, %s663_s1 }
  0x16   :  { %p507_p10 = pnand %p505_p9, %p502_p8 }
  0x18   :  { %510 = shalt.err (!%p507_p10)
}
  0x19   :  { %s511_s24 = scalar_lea.vmem %s32_s16, 256  ;;  %p516_p12 = scmp.lt.s32.totalorder %s32_s16, %s32_s16 }
  0x1a   :  { %p512_p11 = scmp.ne.s32.totalorder %s32_s16, %s511_s24  ;;  %p517_p13 = scmp.lt.s32.totalorder %s511_s24, %s511_s24 }
  0x1c   :  { %p518_p0 = por %p517_p13, %p516_p12 }
  0x1e   :  { %p519_p1 = pnand %p518_p0, %p512_p11 }
  0x20   :  { %522 = shalt.err (!%p519_p1)
}
  0x21   :  { %37 = dma.hbm_to_vmem [thread:$0]  %s663_s1, 256, %s32_s16, [#allocation5], %s528_s11, %s528_s11, %s529_s12  }
  0x22   :  { %523 = dma.done.wait [#allocation3], 256  }
  0x23   :  { %524 = vsyncadd [#allocation3], 4294967040 }
  0x24   :  { %525 = dma.done.wait [#allocation5], 256  }
  0x25   :  { %526 = vsyncadd [#allocation5], 4294967040  ;;  %vm65_vm0 = vcmask 130048   ;;  %v56_v0 = vld [vmem:[#allocation4] sm:$0xff]  ;;  %v57_v1 = vld [vmem:[#allocation4 + $0x8] sm:$0xff]  ;;  %vm164_vm1 = vcmask 523264  }
  0x26   :  { %v54_v2 = vld [vmem:[#allocation2] sm:$0xff]  ;;  %v431_v3 = vpack.c.bf16 %v57_v1, %v56_v0  ;;  %v55_v4 = vld [vmem:[#allocation2 + $0x8] sm:$0xff]  ;;  %v151_v8 = vld [vmem:[%s665_s3 + $0x10] sm:$0xff]  ;;  %vm344_vm2 = vcmask 31744  }
  0x27   :  { %390 = vmatprep.mubr.msk.f32.mxu0 %vm65_vm0, %v54_v2  ;;  %v149_v5 = vld [vmem:[%s665_s3] sm:$0xff]  ;;  %v150_v6 = vld [vmem:[%s665_s3 + $0x8] sm:$0xff]  ;;  %v152_v9 = vld [vmem:[%s665_s3 + $0x18] sm:$0xff] }
  0x28   :  { %432 = vmatprep.subr.bf16.mxu0 %v431_v3  ;;  %v435_v7 = vpack.c.bf16 %v150_v6, %v149_v5  ;;  %v439_v10 = vpack.c.bf16 %v152_v9, %v151_v8  ;;  %v153_v11 = vld [vmem:[%s665_s3 + $0x20] sm:$0xff]  ;;  %v154_v12 = vld [vmem:[%s665_s3 + $0x28] sm:$0xff]  ;;  %v155_v13 = vld [vmem:[%s665_s3 + $0x30] sm:$0xff] }
  0x29   :  { %434 = vmatpush3.bf16.msra.mxu0 %v431_v3  ;;  %v443_v14 = vpack.c.bf16 %v154_v12, %v153_v11  ;;  %v156_v15 = vld [vmem:[%s665_s3 + $0x38] sm:$0xff]  ;;  %v353_v17 = vld [vmem:[%s664_s2] ss:$0 sm:$0xff]  ;;  %v249_v25 = vld [vmem:[%s667_s5 + $0x8] sm:$0xff] }
  0x2a   :  { %436 = vmatprep.subr.bf16.mxu1 %v435_v7  ;;  %v447_v16 = vpack.c.bf16 %v156_v15, %v155_v13  ;;  %v248_v24 = vld [vmem:[%s667_s5] sm:$0xff]  ;;  %v250_v27 = vld [vmem:[%s667_s5 + $0x10] sm:$0xff]  ;;  %v251_v28 = vld [vmem:[%s667_s5 + $0x18] sm:$0xff] }
  0x2b   :  { %438 = vmatpush3.bf16.msra.mxu1 %v435_v7  ;;  %v451_v26 = vpack.c.bf16 %v249_v25, %v248_v24  ;;  %v455_v29 = vpack.c.bf16 %v251_v28, %v250_v27  ;;  %v252_v30 = vld [vmem:[%s667_s5 + $0x20] sm:$0xff]  ;;  %v253_v31 = vld [vmem:[%s667_s5 + $0x28] sm:$0xff]  ;;  %v254_v32 = vld [vmem:[%s667_s5 + $0x30] sm:$0xff] }
  0x2c   :  { %391 = vmatmul.mubr.msk.f32.vlgmr.msra.gmra.mrb[0].mxu0 %vm65_vm0, %v55_v4  ;;  %440 = vmatprep.subr.bf16.mxu1 %v439_v10  ;;  %v459_v33 = vpack.c.bf16 %v253_v31, %v252_v30  ;;  %v255_v34 = vld [vmem:[%s667_s5 + $0x38] sm:$0xff]  ;;  %v356_v36 = vld [vmem:[%s666_s4] ss:$0 sm:$0xff] }
  0x2d   :  { %452 = vmatprep.subr.bf16.mxu0 %v451_v26  ;;  %v463_v35 = vpack.c.bf16 %v255_v34, %v254_v32  ;;  %v359_v43 = vld [vmem:[%s668_s6] ss:$0 sm:$0xff] }
  0x2e   :  { %454 = vmatpush3.bf16.msra.mxu0 %v451_v26 }
  0x2f   :  { %442 = vmatpush3.bf16.msra.mxu1 %v439_v10  ;;  %456 = vmatprep.subr.bf16.mxu0 %v455_v29 }
  0x30   :  { %444 = vmatprep.subr.bf16.mxu1 %v443_v14 }
  0x32   :  { %458 = vmatpush3.bf16.msra.mxu0 %v455_v29 }
  0x33   :  { %446 = vmatpush3.bf16.msra.mxu1 %v443_v14  ;;  %460 = vmatprep.subr.bf16.mxu0 %v459_v33 }
  0x34   :  { %448 = vmatprep.subr.bf16.mxu1 %v447_v16 }
  0x36   :  { %462 = vmatpush3.bf16.msra.mxu0 %v459_v33 }
  0x37   :  { %450 = vmatpush3.bf16.msra.mxu1 %v447_v16  ;;  %464 = vmatprep.subr.bf16.mxu0 %v463_v35 }
  0x3a   :  { %466 = vmatpush3.bf16.msra.mxu0 %v463_v35 }
  0xff   :  { %v392_v18 = vpop.f32.mrb[0].mxu0 }
 0x100   :  { %v144_v19 = vadd.f32 %v392_v18, %v353_v17  ;;  %v138_v20 = vpop.f32.mrb[1].mxu0 }
 0x101   :  { %v139_v21 = vadd.f32 %v353_v17, %v138_v20 }
 0x103   :  { %471 = vtanh.f32 %v139_v21 }
 0x104   :  { %473 = vtanh.f32 %v144_v19 }
 0x10d   :  { %v472_v22 = vpop.eup %471 }
 0x10e   :  { %v474_v23 = vpop.eup %473  ;;  %409 = vmatprep.mubr.msk.f32.mxu1 %vm164_vm1, %v472_v22 }
 0x10f   :  { %410 = vmatmul.mubr.msk.f32.vlgmr.msra.gmra.mrb[0].mxu1 %vm164_vm1, %v474_v23 }
 0x1e2   :  { %v411_v37 = vpop.f32.mrb[0].mxu1 }
 0x1e3   :  { %v243_v38 = vadd.f32 %v411_v37, %v356_v36  ;;  %v237_v39 = vpop.f32.mrb[1].mxu1 }
 0x1e4   :  { %v238_v40 = vadd.f32 %v356_v36, %v237_v39 }
 0x1e6   :  { %475 = vtanh.f32 %v238_v40 }
 0x1e7   :  { %477 = vtanh.f32 %v243_v38 }
 0x1f0   :  { %v476_v41 = vpop.eup %475 }
 0x1f1   :  { %v478_v42 = vpop.eup %477  ;;  %428 = vmatprep.mubr.msk.f32.mxu0 %vm164_vm1, %v476_v41 }
 0x1f2   :  { %429 = vmatmul.mubr.msk.f32.vlgmr.msra.gmra.mrb[2].mxu0 %vm164_vm1, %v478_v42 }
 0x2c5   :  { %v430_v44 = vpop.f32.mrb[2].mxu0 }
 0x2c6   :  { %v341_v45 = vadd.f32 %v430_v44, %v359_v43  ;;  %v335_v46 = vpop.f32.mrb[3].mxu0 }
 0x2c7   :  { %v336_v47 = vadd.f32 %v359_v43, %v335_v46 }
 0x2c8   :  { %346 = vst.msk [vmem:[%s669_s7 + $0x8] sm:$0xff] %vm344_vm2, %v341_v45 }
 0x2c9   :  { %345 = vst.msk [vmem:[%s669_s7] sm:$0xff] %vm344_vm2, %v336_v47 }
 0x2ca   :  { %351 = vsyncpa [#allocation3], 1 }
 0x2cb   :  { %352 = vsyncpa [#allocation5], 1 }

</bundles_post_ra>
